<compile_context>
chip_gen: v5e
topology: v5e:2x2
jax: 0.10.0
libtpu: 0.0.40
codegen_flags: <defaults>
</compile_context>

<pallas_src>
import functools

import jax
import jax.numpy as jnp
from jax.experimental import pallas as pl
from jax.experimental.pallas import tpu as pltpu

LANES = 128


def _round_up(a, b):
    return ((a + b - 1) // b) * b


def _num_tc_split():
    """2-way grid split only on chips with 2 TensorCores per device
    (v4 / v5p megacore, v7x); 1 on single-TC chips (v5e / v6e)."""
    try:
        kind = jax.devices()[0].device_kind.lower()
    except Exception:
        return 1
    if any(tag in kind for tag in ("v4", "v5p", "v5 p", "v7", "7x")):
        return 2
    return 1


def _masked_l1_kernel(x_ref, t_ref, m_ref, num_ref, den_ref, *, rows, block_rows):
    c = pl.program_id(0)            # parallel chunk (multi-TensorCore split)
    s = pl.program_id(1)            # sequential step within the chunk
    n_steps = pl.num_programs(1)

    @pl.when(s == 0)
    def _():
        num_ref[...] = jnp.zeros_like(num_ref)
        den_ref[...] = jnp.zeros_like(den_ref)

    x = x_ref[...].astype(jnp.float32)
    t = t_ref[...].astype(jnp.float32)
    m = m_ref[...].astype(jnp.float32)
    w = jnp.abs(x - t) * m

    blk = c * n_steps + s
    # True only for the ragged last block (block overshoots `rows`) and for the
    # clamped overshoot blocks of the parallel split (blk >= n_blocks).
    needs_mask = (blk + 1) * block_rows > rows

    @pl.when(jnp.logical_not(needs_mask))
    def _():
        # Fast path: full interior block -- no iota / compare / select work.
        num_ref[...] += w.reshape(-1, 8, LANES).sum(axis=0)[None]
        den_ref[...] += m.reshape(-1, 8, LANES).sum(axis=0)[None]

    @pl.when(needs_mask)
    def _():
        # Slow path: zero out-of-range rows with jnp.where (not multiply), so
        # NaN/Inf garbage in the out-of-bounds region cannot leak in.
        row_ids = jax.lax.broadcasted_iota(jnp.int32, (block_rows, LANES), 0)
        valid = (blk * block_rows + row_ids) < rows
        wm = jnp.where(valid, w, 0.0)
        mm = jnp.where(valid, m, 0.0)
        num_ref[...] += wm.reshape(-1, 8, LANES).sum(axis=0)[None]
        den_ref[...] += mm.reshape(-1, 8, LANES).sum(axis=0)[None]


def masked_l1_loss(inp, target, mask, *, block_rows=2048, n_split=None):
    """sum(|inp - target| * mask) / sum(mask) via a Pallas TPU kernel.

    Inputs may be any floating dtype; `mask` may stay bool/int8/bf16 (it is
    cast to f32 inside the kernel). An all-zero mask gives NaN, matching the
    PyTorch reference.
    """
    n = inp.size
    x = inp.reshape(-1)
    t = target.reshape(-1)
    m = mask.reshape(-1)

    cols = LANES
    rows = n // cols                 # full lane-rows streamed by the kernel
    n_main = rows * cols
    tail = n - n_main                # < 128 leftover elements

    num = jnp.zeros((), jnp.float32)
    den = jnp.zeros((), jnp.float32)

    if tail:
        # Tiny (<128 element) JAX epilogue instead of padding/copying all
        # three full arrays.
        xt = x[n_main:].astype(jnp.float32)
        tt = t[n_main:].astype(jnp.float32)
        mt = m[n_main:].astype(jnp.float32)
        num = jnp.sum(jnp.abs(xt - tt) * mt)
        den = jnp.sum(mt)

    if rows > 0:
        if tail:
            X = x[:n_main].reshape(rows, cols)
            T = t[:n_main].reshape(rows, cols)
            M = m[:n_main].reshape(rows, cols)
        else:
            # Lane-aligned common case: pure metadata reshape, no copy.
            X = x.reshape(rows, cols)
            T = t.reshape(rows, cols)
            M = m.reshape(rows, cols)

        # Tile sizing: as big as the array needs, multiple of 32 sublanes
        # (covers f32/bf16/int8 packing). Default 2048 rows = 1 MiB f32/input.
        block = min(block_rows, _round_up(rows, 32))
        block = _round_up(block, 32)
        n_blocks = pl.cdiv(rows, block)

        if n_split is None:
            n_split = _num_tc_split()
        n_par = n_split if n_blocks >= n_split else 1
        n_steps = pl.cdiv(n_blocks, n_par)

        def in_index(c, s):
            blk = c * n_steps + s
            # Clamp overshoot of the last chunk; the kernel's masked path
            # zeroes any duplicated contribution.
            return (jnp.minimum(blk, n_blocks - 1), 0)

        in_spec = pl.BlockSpec((block, cols), in_index)
        out_spec = pl.BlockSpec((1, 8, cols), lambda c, s: (c, 0, 0))

        bytes_in = n_main * (
            inp.dtype.itemsize + target.dtype.itemsize + mask.dtype.itemsize
        )
        bytes_out = 2 * n_par * 8 * cols * 4
        cost = pl.CostEstimate(
            flops=5 * n_main, transcendentals=0,
            bytes_accessed=int(bytes_in + bytes_out),
        )

        kernel = functools.partial(_masked_l1_kernel, rows=rows, block_rows=block)

        num_p, den_p = pl.pallas_call(
            kernel,
            out_shape=(
                jax.ShapeDtypeStruct((n_par, 8, cols), jnp.float32),
                jax.ShapeDtypeStruct((n_par, 8, cols), jnp.float32),
            ),
            grid=(n_par, n_steps),
            in_specs=[in_spec, in_spec, in_spec],
            out_specs=(out_spec, out_spec),
            compiler_params=pltpu.CompilerParams(
                dimension_semantics=("parallel", "arbitrary"),
            ),
            cost_estimate=cost,
        )(X, T, M)

        num = num + jnp.sum(num_p)
        den = den + jnp.sum(den_p)

    out_dtype = jnp.result_type(inp.dtype, target.dtype, mask.dtype)
    return (num / den).astype(out_dtype)


def _ref_loss(inp, target, mask):
    x = inp.astype(jnp.float32)
    t = target.astype(jnp.float32)
    m = mask.astype(jnp.float32)
    return jnp.sum(jnp.abs(x - t) * m) / jnp.sum(m)


if __name__ == "__main__":
    key = jax.random.PRNGKey(0)

    # 1) NCHW inputs matching the module's typical use, lane-aligned size.
    k1, k2, k3, key = jax.random.split(key, 4)
    shape = (2, 4, 16, 16)
    inp = jax.random.normal(k1, shape, dtype=jnp.float32)
    target = jax.random.normal(k2, shape, dtype=jnp.float32)
    mask = (jax.random.uniform(k3, shape) > 0.5).astype(jnp.float32)
    loss = jax.block_until_ready(masked_l1_loss(inp, target, mask))
    ref = _ref_loss(inp, target, mask)
    assert jnp.allclose(loss, ref, rtol=1e-4, atol=1e-5), (loss, ref)

    # 2) Ragged element count (exercises the prefix/tail split, no padding).
    k1, k2, k3, key = jax.random.split(key, 4)
    shape = (2, 3, 7, 5)
    inp = jax.random.normal(k1, shape, dtype=jnp.float32)
    target = jax.random.normal(k2, shape, dtype=jnp.float32)
    mask = (jax.random.uniform(k3, shape) > 0.5).astype(jnp.float32)
    loss = jax.block_until_ready(masked_l1_loss(inp, target, mask))
    ref = _ref_loss(inp, target, mask)
    assert jnp.allclose(loss, ref, rtol=1e-4, atol=1e-5), (loss, ref)

    # 3) Multi-block grid + parallel split/clamp + narrow (int8) mask dtype.
    k1, k2, k3, key = jax.random.split(key, 4)
    shape = (5, 4, 16, 64)  # 20480 elems -> 160 rows, block=32 -> 5 blocks
    inp = jax.random.normal(k1, shape, dtype=jnp.float32)
    target = jax.random.normal(k2, shape, dtype=jnp.float32)
    mask = (jax.random.uniform(k3, shape) > 0.5).astype(jnp.int8)
    loss = jax.block_until_ready(masked_l1_loss(inp, target, mask, block_rows=32))
    ref = _ref_loss(inp, target, mask)
    assert jnp.allclose(loss, ref, rtol=1e-4, atol=1e-5), (loss, ref)

    # 4) Tiny input (< 128 elements) -> pure JAX epilogue path.
    k1, k2, k3, key = jax.random.split(key, 4)
    shape = (3, 14)
    inp = jax.random.normal(k1, shape, dtype=jnp.float32)
    target = jax.random.normal(k2, shape, dtype=jnp.float32)
    mask = (jax.random.uniform(k3, shape) > 0.5).astype(jnp.float32)
    loss = jax.block_until_ready(masked_l1_loss(inp, target, mask))
    ref = _ref_loss(inp, target, mask)
    assert jnp.allclose(loss, ref, rtol=1e-4, atol=1e-5), (loss, ref)

    print("KERNEL_OK")
</pallas_src>

<mosaic_0001>
module attributes {stable_mosaic.version = 11 : i64} {
  func.func @_masked_l1_kernel(%arg0: i32, %arg1: i32, %arg2: memref<32x128xf32, #tpu.memory_space<vmem>>, %arg3: memref<32x128xf32, #tpu.memory_space<vmem>>, %arg4: memref<32x128xf32, #tpu.memory_space<vmem>>, %arg5: memref<1x8x128xf32, #tpu.memory_space<vmem>>, %arg6: memref<1x8x128xf32, #tpu.memory_space<vmem>>) attributes {dimension_semantics = [#tpu.dimension_semantics<parallel>, #tpu.dimension_semantics<arbitrary>], iteration_bounds = array<i64: 1, 1>, scalar_prefetch = 0 : i64, scratch_operands = 0 : i64, tpu.core_type = #tpu.core_type<tc>, window_params = [{transform_indices = @transform_0, window_bounds = array<i64: 32, 128>}, {transform_indices = @transform_1, window_bounds = array<i64: 32, 128>}, {transform_indices = @transform_2, window_bounds = array<i64: 32, 128>}, {transform_indices = @transform_3, window_bounds = array<i64: 1, 8, 128>}, {transform_indices = @transform_4, window_bounds = array<i64: 1, 8, 128>}]} {
    %c0_i32 = arith.constant 0 : i32
    %0 = arith.cmpi eq, %arg1, %c0_i32 : i32
    %1 = arith.extui %0 : i1 to i32
    %c0_i32_0 = arith.constant 0 : i32
    %2 = arith.cmpi ne, %1, %c0_i32_0 : i32
    scf.if %2 {
      %cst = arith.constant 0.000000e+00 : f32
      %19 = vector.broadcast %cst : f32 to vector<1x8x128xf32>
      %c0_9 = arith.constant 0 : index
      %c0_10 = arith.constant 0 : index
      %c0_11 = arith.constant 0 : index
      %20 = vector.load %arg5[%c0_9, %c0_10, %c0_11] : memref<1x8x128xf32, #tpu.memory_space<vmem>>, vector<1x8x128xf32>
      tpu.vector_store %arg5[%c0_9, %c0_10, %c0_11], %19 {strides = array<i32>} : memref<1x8x128xf32, #tpu.memory_space<vmem>>, vector<1x8x128xf32>,
      %cst_12 = arith.constant 0.000000e+00 : f32
      %21 = vector.broadcast %cst_12 : f32 to vector<1x8x128xf32>
      %c0_13 = arith.constant 0 : index
      %c0_14 = arith.constant 0 : index
      %c0_15 = arith.constant 0 : index
      %22 = vector.load %arg6[%c0_13, %c0_14, %c0_15] : memref<1x8x128xf32, #tpu.memory_space<vmem>>, vector<1x8x128xf32>
      tpu.vector_store %arg6[%c0_13, %c0_14, %c0_15], %21 {strides = array<i32>} : memref<1x8x128xf32, #tpu.memory_space<vmem>>, vector<1x8x128xf32>,
    } else {
    }
    %c0 = arith.constant 0 : index
    %c0_1 = arith.constant 0 : index
    %3 = vector.load %arg2[%c0, %c0_1] : memref<32x128xf32, #tpu.memory_space<vmem>>, vector<32x128xf32>
    %c0_2 = arith.constant 0 : index
    %c0_3 = arith.constant 0 : index
    %4 = vector.load %arg3[%c0_2, %c0_3] : memref<32x128xf32, #tpu.memory_space<vmem>>, vector<32x128xf32>
    %c0_4 = arith.constant 0 : index
    %c0_5 = arith.constant 0 : index
    %5 = vector.load %arg4[%c0_4, %c0_5] : memref<32x128xf32, #tpu.memory_space<vmem>>, vector<32x128xf32>
    %6 = arith.subf %3, %4 : vector<32x128xf32>
    %7 = math.absf %6 : vector<32x128xf32>
    %8 = arith.mulf %7, %5 : vector<32x128xf32>
    %c1_i32 = arith.constant 1 : i32
    %9 = arith.muli %arg0, %c1_i32 : i32
    %10 = arith.addi %9, %arg1 : i32
    %c1_i32_6 = arith.constant 1 : i32
    %11 = arith.addi %10, %c1_i32_6 : i32
    %c32_i32 = arith.constant 32 : i32
    %12 = arith.muli %11, %c32_i32 : i32
    %c16_i32 = arith.constant 16 : i32
    %13 = arith.cmpi sgt, %12, %c16_i32 : i32
    %true = arith.constant true
    %14 = arith.xori %13, %true : i1
    %15 = arith.extui %14 : i1 to i32
    %c0_i32_7 = arith.constant 0 : i32
    %16 = arith.cmpi ne, %15, %c0_i32_7 : i32
    scf.if %16 {
      %c0_9 = arith.constant 0 : index
      %c0_10 = arith.constant 0 : index
      %c0_11 = arith.constant 0 : index
      %19 = vector.load %arg5[%c0_9, %c0_10, %c0_11] : memref<1x8x128xf32, #tpu.memory_space<vmem>>, vector<1x8x128xf32>
      %20 = vector.shape_cast %8 : vector<32x128xf32> to vector<4x8x128xf32>
      %cst = arith.constant dense<0.000000e+00> : vector<8x128xf32>
      %21 = vector.multi_reduction <add>, %20, %cst [0] : vector<4x8x128xf32> to vector<8x128xf32>
      %22 = vector.shape_cast %21 : vector<8x128xf32> to vector<1x8x128xf32>
      %23 = arith.addf %19, %22 : vector<1x8x128xf32>
      %c0_12 = arith.constant 0 : index
      %c0_13 = arith.constant 0 : index
      %c0_14 = arith.constant 0 : index
      %24 = vector.load %arg5[%c0_12, %c0_13, %c0_14] : memref<1x8x128xf32, #tpu.memory_space<vmem>>, vector<1x8x128xf32>
      tpu.vector_store %arg5[%c0_12, %c0_13, %c0_14], %23 {strides = array<i32>} : memref<1x8x128xf32, #tpu.memory_space<vmem>>, vector<1x8x128xf32>,
      %c0_15 = arith.constant 0 : index
      %c0_16 = arith.constant 0 : index
      %c0_17 = arith.constant 0 : index
      %25 = vector.load %arg6[%c0_15, %c0_16, %c0_17] : memref<1x8x128xf32, #tpu.memory_space<vmem>>, vector<1x8x128xf32>
      %26 = vector.shape_cast %5 : vector<32x128xf32> to vector<4x8x128xf32>
      %cst_18 = arith.constant dense<0.000000e+00> : vector<8x128xf32>
      %27 = vector.multi_reduction <add>, %26, %cst_18 [0] : vector<4x8x128xf32> to vector<8x128xf32>
      %28 = vector.shape_cast %27 : vector<8x128xf32> to vector<1x8x128xf32>
      %29 = arith.addf %25, %28 : vector<1x8x128xf32>
      %c0_19 = arith.constant 0 : index
      %c0_20 = arith.constant 0 : index
      %c0_21 = arith.constant 0 : index
      %30 = vector.load %arg6[%c0_19, %c0_20, %c0_21] : memref<1x8x128xf32, #tpu.memory_space<vmem>>, vector<1x8x128xf32>
      tpu.vector_store %arg6[%c0_19, %c0_20, %c0_21], %29 {strides = array<i32>} : memref<1x8x128xf32, #tpu.memory_space<vmem>>, vector<1x8x128xf32>,
    } else {
    }
    %17 = arith.extui %13 : i1 to i32
    %c0_i32_8 = arith.constant 0 : i32
    %18 = arith.cmpi ne, %17, %c0_i32_8 : i32
    scf.if %18 {
      %19 = tpu.iota {dimensions = array<i32: 0>} : vector<32x128xi32>
      %c32_i32_9 = arith.constant 32 : i32
      %20 = arith.muli %10, %c32_i32_9 : i32
      %21 = vector.broadcast %20 : i32 to vector<32x128xi32>
      %22 = arith.addi %21, %19 : vector<32x128xi32>
      %c16_i32_10 = arith.constant 16 : i32
      %23 = vector.broadcast %c16_i32_10 : i32 to vector<32x128xi32>
      %24 = arith.cmpi slt, %22, %23 : vector<32x128xi32>
      %cst = arith.constant 0.000000e+00 : f32
      %25 = vector.broadcast %cst : f32 to vector<32x128xf32>
      %26 = arith.select %24, %8, %25 : vector<32x128xi1>, vector<32x128xf32>
      %cst_11 = arith.constant 0.000000e+00 : f32
      %27 = vector.broadcast %cst_11 : f32 to vector<32x128xf32>
      %28 = arith.select %24, %5, %27 : vector<32x128xi1>, vector<32x128xf32>
      %c0_12 = arith.constant 0 : index
      %c0_13 = arith.constant 0 : index
      %c0_14 = arith.constant 0 : index
      %29 = vector.load %arg5[%c0_12, %c0_13, %c0_14] : memref<1x8x128xf32, #tpu.memory_space<vmem>>, vector<1x8x128xf32>
      %30 = vector.shape_cast %26 : vector<32x128xf32> to vector<4x8x128xf32>
      %cst_15 = arith.constant dense<0.000000e+00> : vector<8x128xf32>
      %31 = vector.multi_reduction <add>, %30, %cst_15 [0] : vector<4x8x128xf32> to vector<8x128xf32>
      %32 = vector.shape_cast %31 : vector<8x128xf32> to vector<1x8x128xf32>
      %33 = arith.addf %29, %32 : vector<1x8x128xf32>
      %c0_16 = arith.constant 0 : index
      %c0_17 = arith.constant 0 : index
      %c0_18 = arith.constant 0 : index
      %34 = vector.load %arg5[%c0_16, %c0_17, %c0_18] : memref<1x8x128xf32, #tpu.memory_space<vmem>>, vector<1x8x128xf32>
      tpu.vector_store %arg5[%c0_16, %c0_17, %c0_18], %33 {strides = array<i32>} : memref<1x8x128xf32, #tpu.memory_space<vmem>>, vector<1x8x128xf32>,
      %c0_19 = arith.constant 0 : index
      %c0_20 = arith.constant 0 : index
      %c0_21 = arith.constant 0 : index
      %35 = vector.load %arg6[%c0_19, %c0_20, %c0_21] : memref<1x8x128xf32, #tpu.memory_space<vmem>>, vector<1x8x128xf32>
      %36 = vector.shape_cast %28 : vector<32x128xf32> to vector<4x8x128xf32>
      %cst_22 = arith.constant dense<0.000000e+00> : vector<8x128xf32>
      %37 = vector.multi_reduction <add>, %36, %cst_22 [0] : vector<4x8x128xf32> to vector<8x128xf32>
      %38 = vector.shape_cast %37 : vector<8x128xf32> to vector<1x8x128xf32>
      %39 = arith.addf %35, %38 : vector<1x8x128xf32>
      %c0_23 = arith.constant 0 : index
      %c0_24 = arith.constant 0 : index
      %c0_25 = arith.constant 0 : index
      %40 = vector.load %arg6[%c0_23, %c0_24, %c0_25] : memref<1x8x128xf32, #tpu.memory_space<vmem>>, vector<1x8x128xf32>
      tpu.vector_store %arg6[%c0_23, %c0_24, %c0_25], %39 {strides = array<i32>} : memref<1x8x128xf32, #tpu.memory_space<vmem>>, vector<1x8x128xf32>,
    } else {
    }
    return
  }
  func.func @transform_0(%arg0: i32, %arg1: i32) -> (i32, i32) {
    %c1_i32 = arith.constant 1 : i32
    %0 = arith.muli %arg0, %c1_i32 : i32
    %1 = arith.addi %0, %arg1 : i32
    %c0_i32 = arith.constant 0 : i32
    %2 = arith.minsi %1, %c0_i32 : i32
    %c0_i32_0 = arith.constant 0 : i32
    %c0_i32_1 = arith.constant 0 : i32
    return %2, %c0_i32_0 : i32, i32
  }
  func.func @transform_1(%arg0: i32, %arg1: i32) -> (i32, i32) {
    %c1_i32 = arith.constant 1 : i32
    %0 = arith.muli %arg0, %c1_i32 : i32
    %1 = arith.addi %0, %arg1 : i32
    %c0_i32 = arith.constant 0 : i32
    %2 = arith.minsi %1, %c0_i32 : i32
    %c0_i32_0 = arith.constant 0 : i32
    %c0_i32_1 = arith.constant 0 : i32
    return %2, %c0_i32_0 : i32, i32
  }
  func.func @transform_2(%arg0: i32, %arg1: i32) -> (i32, i32) {
    %c1_i32 = arith.constant 1 : i32
    %0 = arith.muli %arg0, %c1_i32 : i32
    %1 = arith.addi %0, %arg1 : i32
    %c0_i32 = arith.constant 0 : i32
    %2 = arith.minsi %1, %c0_i32 : i32
    %c0_i32_0 = arith.constant 0 : i32
    %c0_i32_1 = arith.constant 0 : i32
    return %2, %c0_i32_0 : i32, i32
  }
  func.func @transform_3(%arg0: i32, %arg1: i32) -> (i32, i32, i32) {
    %c0_i32 = arith.constant 0 : i32
    %c0_i32_0 = arith.constant 0 : i32
    %c0_i32_1 = arith.constant 0 : i32
    return %arg0, %c0_i32, %c0_i32_0 : i32, i32, i32
  }
  func.func @transform_4(%arg0: i32, %arg1: i32) -> (i32, i32, i32) {
    %c0_i32 = arith.constant 0 : i32
    %c0_i32_0 = arith.constant 0 : i32
    %c0_i32_1 = arith.constant 0 : i32
    return %arg0, %c0_i32, %c0_i32_0 : i32, i32, i32
  }
}

</mosaic_0001>

<bundles_post_ra>
// kernel: tpu_custom_call.1
= control target key start
LH: loop header
LB: loop body
LE: loop exit
PB: predicated region body
PF: predicated region fallthrough
CT: control target
= control target key end

     0   :  { %10 = vsyncpa [#allocation3], 0  ;;  %s427_s0 = inlined_call_operand.hbm [shape: f32[16,128], index: 0, kind: input, shape index: {}]   ;;  %s428_s1 = inlined_call_operand.hbm [shape: f32[16,128], index: 1, kind: input, shape index: {}]   ;;  %s429_s2 = inlined_call_operand.hbm [shape: f32[16,128], index: 2, kind: input, shape index: {}]   ;;  %s430_s3 = inlined_call_operand.hbm [shape: f32[1,8,128], index: 3, kind: output, shape index: {0}]   ;;  %s431_s4 = inlined_call_operand.hbm [shape: f32[1,8,128], index: 4, kind: output, shape index: {1}]  }
   0x1   :  { %11 = vsyncpa [#allocation6], 0 }
   0x2   :  { %12 = vsyncpa [#allocation4], 0 }
   0x3   :  { %13 = vsyncpa [#allocation10], 0 }
   0x4   :  { %24 = vsyncadd [#allocation3], 256  ;;  %s29_s17 = sshll.u32 %s427_s0, 4  ;;  %s380_s18 = smov [#allocation2]   ;;  %s30_s17 = int_to_ptr.hbm [resolvable:$true] %s29_s17 }
   0x5   :  { %s31_s19 = sshll.u32 %s380_s18, 4  ;;  %s381_s20 = smov 128   ;;  %s32_s19 = int_to_ptr.vmem [resolvable:$true] %s31_s19 }
   0x6   :  { %s382_s21 = smov 8  }
   0x7   :  { %37 = dma.hbm_to_vmem [thread:$0]  %s30_s17, 256, %s32_s19, [#allocation3], %s381_s20, %s381_s20, %s382_s21  }
   0x8   :  { %48 = vsyncadd [#allocation6], 256  ;;  %s53_s24 = sshll.u32 %s428_s1, 4  ;;  %s383_s25 = smov [#allocation5]   ;;  %s54_s24 = int_to_ptr.hbm [resolvable:$true] %s53_s24 }
   0x9   :  { %s55_s26 = sshll.u32 %s383_s25, 4  ;;  %s56_s26 = int_to_ptr.vmem [resolvable:$true] %s55_s26 }
   0xa   :  { %61 = dma.hbm_to_vmem [thread:$0]  %s54_s24, 256, %s56_s26, [#allocation6], %s381_s20, %s381_s20, %s382_s21  }
   0xb   :  { %72 = vsyncadd [#allocation6], 256  ;;  %s77_s28 = sshll.u32 %s429_s2, 4  ;;  %s384_s29 = smov [#allocation7]   ;;  %s78_s28 = int_to_ptr.hbm [resolvable:$true] %s77_s28 }
   0xc   :  { %s79_s30 = sshll.u32 %s384_s29, 4  ;;  %s80_s30 = int_to_ptr.vmem [resolvable:$true] %s79_s30 }
   0xd   :  { %85 = dma.hbm_to_vmem [thread:$0]  %s78_s28, 256, %s80_s30, [#allocation6], %s381_s20, %s381_s20, %s382_s21  }
   0xe   :  { %372 = dma.done.wait [#allocation3], 512  }
   0xf   :  { %373 = vsyncadd [#allocation3], 4294966784 }
  0x10   :  { %374 = dma.done.wait [#allocation6], 1024  }
  0x11   :  { %375 = vsyncadd [#allocation6], 4294966272  ;;  %v122_v0 = vld [vmem:[#allocation2] sm:$0xff]  ;;  %v123_v1 = vld [vmem:[#allocation2 + $0x8] sm:$0xff]  ;;  %s385_s1 = smov [#allocation9]   ;;  %s222_s7 = sshll.u32 %s431_s4, 4  ;;  %s223_s7 = int_to_ptr.hbm [resolvable:$true] %s222_s7 }
  0x12   :  { %v126_v2 = vld [vmem:[#allocation5] sm:$0xff]  ;;  %v127_v3 = vld [vmem:[#allocation5 + $0x8] sm:$0xff]  ;;  %s220_s5 = sshll.u32 %s385_s1, 4  ;;  %s386_s8 = smov [#allocation8]   ;;  %s221_s5 = int_to_ptr.vmem [resolvable:$true] %s220_s5 }
  0x13   :  { %v130_v4 = vld [vmem:[#allocation7] sm:$0xff]  ;;  %v131_v5 = vld [vmem:[#allocation7 + $0x8] sm:$0xff]  ;;  %v134_v6 = vsub.f32 %v122_v0, %v126_v2  ;;  %v135_v7 = vsub.f32 %v123_v1, %v127_v3  ;;  %s209_s9 = sshll.u32 %s386_s8, 4  ;;  %s211_s12 = sshll.u32 %s430_s3, 4  ;;  %s210_s9 = int_to_ptr.vmem [resolvable:$true] %s209_s9  ;;  %s212_s12 = int_to_ptr.hbm [resolvable:$true] %s211_s12 }
  0x14   :  { %v199_v8 = vadd.f32 %v131_v5, %v130_v4 }
  0x15   :  { %v138_v9 = vand.u32 2147483647, %v134_v6  ;;  %v139_v10 = vand.u32 2147483647, %v135_v7 }
  0x16   :  { %203 = vst [vmem:[#allocation9] sm:$0xff] %v199_v8 }
  0x17   :  { %v142_v11 = vmul.f32 %v138_v9, %v130_v4  ;;  %v143_v12 = vmul.f32 %v139_v10, %v131_v5  ;;  %225 = dma.vmem_to_hbm [thread:$0]  %s221_s5, 128, %s223_s7, [#allocation10]  }
  0x19   :  { %v193_v13 = vadd.f32 %v143_v12, %v142_v11 }
  0x1b   :  { %197 = vst [vmem:[#allocation8] sm:$0xff] %v193_v13 }
  0x1c   :  { %214 = dma.vmem_to_hbm [thread:$0]  %s210_s9, 128, %s212_s12, [#allocation4]  }
  0x1d   :  { %376 = dma.done.wait [#allocation4], 128  }
  0x1e   :  { %377 = vsyncadd [#allocation4], 4294967168 }
  0x1f   :  { %378 = dma.done.wait [#allocation10], 128  }
  0x20   :  { %379 = vsyncadd [#allocation10], 4294967168 }
  0x21   :  { %234 = vsyncpa [#allocation3], 1 }
  0x22   :  { %235 = vsyncpa [#allocation6], 1 }
  0x23   :  { %236 = vsyncpa [#allocation4], 1 }
  0x24   :  { %237 = vsyncpa [#allocation10], 1 }

</bundles_post_ra>
